<compile_context>
chip_gen: v5e
topology: v5e:2x2
jax: 0.10.0
libtpu: 0.0.40
codegen_flags: <defaults>
</compile_context>

<pallas_src>
import jax
import jax.numpy as jnp
from jax.experimental import pallas as pl
from jax.experimental.pallas import tpu as pltpu

LANE = 128  # TPU vreg lane width


def _round_up(n, m):
    return ((n + m - 1) // m) * m


def qnetwork_kernel(x_ref, w1_ref, b1_ref, w2_ref, b2_ref, w3_ref, b3_ref, out_ref):
    # x tile: (TILE_B, S) bf16; weights bf16; biases f32; MXU accumulates in f32.
    x = x_ref[...]
    # fc1 + ReLU
    h1 = jnp.dot(x, w1_ref[...], preferred_element_type=jnp.float32) + b1_ref[...]
    h1 = jnp.maximum(h1, 0.0).astype(jnp.bfloat16)
    # fc2 + ReLU
    h2 = jnp.dot(h1, w2_ref[...], preferred_element_type=jnp.float32) + b2_ref[...]
    h2 = jnp.maximum(h2, 0.0).astype(jnp.bfloat16)
    # fc3 (no activation) -> lane-dense (TILE_B, 128) f32 store
    out_ref[...] = jnp.dot(h2, w3_ref[...], preferred_element_type=jnp.float32) + b3_ref[...]


def qnetwork_forward(x, params, *, tile_b=512):
    """x: (B, state_size) float32; params: dict of w1,b1,w2,b2,w3,b3 (float32)."""
    w1, b1, w2, b2, w3, b3 = (params[k] for k in ("w1", "b1", "w2", "b2", "w3", "b3"))
    B, S = x.shape
    H = w1.shape[1]
    A = w3.shape[1]
    A_pad = _round_up(max(A, LANE), LANE)  # lane-dense output slab (>= 128)

    # Batch tile: multiple of 8 (sublane rule), no larger than the (padded) batch.
    tile_b = max(8, min(tile_b, _round_up(B, 8)))
    tile_b = _round_up(tile_b, 8)
    B_pad = _round_up(B, tile_b)

    # bf16 operands for the MXU; zero-pad batch rows and the action lane dimension.
    x_bf = x.astype(jnp.bfloat16)
    if B_pad != B:
        x_bf = jnp.pad(x_bf, ((0, B_pad - B), (0, 0)))
    w1_bf = w1.astype(jnp.bfloat16)
    w2_bf = w2.astype(jnp.bfloat16)
    w3_bf = jnp.pad(w3, ((0, 0), (0, A_pad - A))).astype(jnp.bfloat16)
    b3_p = jnp.pad(b3, ((0, 0), (0, A_pad - A)))  # biases stay f32

    grid = (B_pad // tile_b,)
    const = lambda i: (0, 0)  # weights/biases: same block every step -> stay resident

    flops = 2 * B_pad * (S * H + H * H + H * A_pad)
    bytes_accessed = (
        x_bf.size * 2 + w1_bf.size * 2 + w2_bf.size * 2 + w3_bf.size * 2
        + b1.size * 4 + b2.size * 4 + b3_p.size * 4 + B_pad * A_pad * 4
    )

    out = pl.pallas_call(
        qnetwork_kernel,
        out_shape=jax.ShapeDtypeStruct((B_pad, A_pad), jnp.float32),
        grid_spec=pltpu.PrefetchScalarGridSpec(
            num_scalar_prefetch=0,
            grid=grid,
            in_specs=[
                pl.BlockSpec((tile_b, S), lambda i: (i, 0)),  # x: tiled over batch
                pl.BlockSpec((S, H), const),                   # w1
                pl.BlockSpec((1, H), const),                   # b1
                pl.BlockSpec((H, H), const),                   # w2
                pl.BlockSpec((1, H), const),                   # b2
                pl.BlockSpec((H, A_pad), const),               # w3 (lane-padded)
                pl.BlockSpec((1, A_pad), const),               # b3 (lane-padded)
            ],
            out_specs=pl.BlockSpec((tile_b, A_pad), lambda i: (i, 0)),
        ),
        compiler_params=pltpu.CompilerParams(
            dimension_semantics=("parallel",),  # megacore / 2-TC (v7x) sharding of batch
        ),
        cost_estimate=pl.CostEstimate(
            flops=flops, transcendentals=0, bytes_accessed=bytes_accessed
        ),
    )(x_bf, w1_bf, b1, w2_bf, b2, w3_bf, b3_p)

    return out[:B, :A]


def init_params(key, state_size, action_size, hidden_units=64):
    """Deterministic init mimicking PyTorch nn.Linear default:
    U(-1/sqrt(fan_in), 1/sqrt(fan_in)) for both weight and bias."""
    keys = jax.random.split(key, 6)

    def linear(kw, kb, fan_in, fan_out):
        bound = 1.0 / jnp.sqrt(float(fan_in))
        w = jax.random.uniform(kw, (fan_in, fan_out), jnp.float32, -bound, bound)
        b = jax.random.uniform(kb, (1, fan_out), jnp.float32, -bound, bound)
        return w, b

    w1, b1 = linear(keys[0], keys[1], state_size, hidden_units)
    w2, b2 = linear(keys[2], keys[3], hidden_units, hidden_units)
    w3, b3 = linear(keys[4], keys[5], hidden_units, action_size)
    return {"w1": w1, "b1": b1, "w2": w2, "b2": b2, "w3": w3, "b3": b3}


def reference_forward(x, params):
    h1 = jnp.maximum(x @ params["w1"] + params["b1"], 0.0)
    h2 = jnp.maximum(h1 @ params["w2"] + params["b2"], 0.0)
    return h2 @ params["w3"] + params["b3"]


if __name__ == "__main__":
    state_size = 8
    action_size = 4
    batch = 40  # not a multiple of the tile -> exercises batch padding + multi-step grid

    key = jax.random.PRNGKey(0)
    k_params, k_x = jax.random.split(key)
    params = init_params(k_params, state_size, action_size)
    x = jax.random.normal(k_x, (batch, state_size), dtype=jnp.float32)

    # Small tile -> 3-step grid (40 rows padded to 48, tile_b=16).
    out = qnetwork_forward(x, params, tile_b=16)
    out = jax.block_until_ready(out)

    ref = reference_forward(x, params)
    assert out.shape == (batch, action_size)
    # bf16 operands with f32 accumulation: tolerance loosened vs pure-f32 reference.
    assert jnp.allclose(out, ref, atol=5e-2, rtol=5e-2), "mismatch vs pure-JAX reference"

    # Production-default tile size (clamped to the small batch): single-step grid.
    out2 = jax.block_until_ready(qnetwork_forward(x, params))
    assert out2.shape == (batch, action_size)
    assert jnp.allclose(out2, ref, atol=5e-2, rtol=5e-2), "mismatch (default tile)"

    print("KERNEL_OK")
</pallas_src>

<mosaic_0001>
module attributes {stable_mosaic.version = 11 : i64} {
  func.func @qnetwork_kernel(%arg0: i32, %arg1: memref<16x8xbf16, #tpu.memory_space<vmem>>, %arg2: memref<8x64xbf16, #tpu.memory_space<vmem>>, %arg3: memref<1x64xf32, #tpu.memory_space<vmem>>, %arg4: memref<64x64xbf16, #tpu.memory_space<vmem>>, %arg5: memref<1x64xf32, #tpu.memory_space<vmem>>, %arg6: memref<64x128xbf16, #tpu.memory_space<vmem>>, %arg7: memref<1x128xf32, #tpu.memory_space<vmem>>, %arg8: memref<16x128xf32, #tpu.memory_space<vmem>>) attributes {dimension_semantics = [#tpu.dimension_semantics<parallel>], iteration_bounds = array<i64: 3>, scalar_prefetch = 0 : i64, scratch_operands = 0 : i64, tpu.core_type = #tpu.core_type<tc>, window_params = [{transform_indices = @transform_0, window_bounds = array<i64: 16, 8>}, {pipeline_mode = #tpu.pipeline_mode<synchronous>, transform_indices = @transform_1, window_bounds = array<i64: 8, 64>}, {pipeline_mode = #tpu.pipeline_mode<synchronous>, transform_indices = @transform_2, window_bounds = array<i64: 1, 64>}, {pipeline_mode = #tpu.pipeline_mode<synchronous>, transform_indices = @transform_3, window_bounds = array<i64: 64, 64>}, {pipeline_mode = #tpu.pipeline_mode<synchronous>, transform_indices = @transform_4, window_bounds = array<i64: 1, 64>}, {pipeline_mode = #tpu.pipeline_mode<synchronous>, transform_indices = @transform_5, window_bounds = array<i64: 64, 128>}, {pipeline_mode = #tpu.pipeline_mode<synchronous>, transform_indices = @transform_6, window_bounds = array<i64: 1, 128>}, {transform_indices = @transform_7, window_bounds = array<i64: 16, 128>}]} {
    %c0 = arith.constant 0 : index
    %c0_0 = arith.constant 0 : index
    %0 = vector.load %arg1[%c0, %c0_0] : memref<16x8xbf16, #tpu.memory_space<vmem>>, vector<16x8xbf16>
    %c0_1 = arith.constant 0 : index
    %c0_2 = arith.constant 0 : index
    %1 = vector.load %arg2[%c0_1, %c0_2] : memref<8x64xbf16, #tpu.memory_space<vmem>>, vector<8x64xbf16>
    %cst = arith.constant dense<0.000000e+00> : vector<16x64xf32>
    %2 = tpu.matmul %0, %1, %cst {dimension_numbers = #tpu.dot_dimension_numbers<[1], [0], [0], [1], [0, 0, 1, 1], [], []>} : vector<16x8xbf16>, vector<8x64xbf16>, vector<16x64xf32> -> vector<16x64xf32>
    %c0_3 = arith.constant 0 : index
    %c0_4 = arith.constant 0 : index
    %3 = vector.load %arg3[%c0_3, %c0_4] : memref<1x64xf32, #tpu.memory_space<vmem>>, vector<1x64xf32>
    %4 = vector.broadcast %3 : vector<1x64xf32> to vector<16x64xf32>
    %5 = arith.addf %2, %4 : vector<16x64xf32>
    %cst_5 = arith.constant 0.000000e+00 : f32
    %6 = vector.broadcast %cst_5 : f32 to vector<16x64xf32>
    %7 = arith.maximumf %5, %6 : vector<16x64xf32>
    %8 = arith.truncf %7 : vector<16x64xf32> to vector<16x64xbf16>
    %c0_6 = arith.constant 0 : index
    %c0_7 = arith.constant 0 : index
    %9 = vector.load %arg4[%c0_6, %c0_7] : memref<64x64xbf16, #tpu.memory_space<vmem>>, vector<64x64xbf16>
    %cst_8 = arith.constant dense<0.000000e+00> : vector<16x64xf32>
    %10 = tpu.matmul %8, %9, %cst_8 {dimension_numbers = #tpu.dot_dimension_numbers<[1], [0], [0], [1], [0, 0, 1, 1], [], []>} : vector<16x64xbf16>, vector<64x64xbf16>, vector<16x64xf32> -> vector<16x64xf32>
    %c0_9 = arith.constant 0 : index
    %c0_10 = arith.constant 0 : index
    %11 = vector.load %arg5[%c0_9, %c0_10] : memref<1x64xf32, #tpu.memory_space<vmem>>, vector<1x64xf32>
    %12 = vector.broadcast %11 : vector<1x64xf32> to vector<16x64xf32>
    %13 = arith.addf %10, %12 : vector<16x64xf32>
    %cst_11 = arith.constant 0.000000e+00 : f32
    %14 = vector.broadcast %cst_11 : f32 to vector<16x64xf32>
    %15 = arith.maximumf %13, %14 : vector<16x64xf32>
    %16 = arith.truncf %15 : vector<16x64xf32> to vector<16x64xbf16>
    %c0_12 = arith.constant 0 : index
    %c0_13 = arith.constant 0 : index
    %17 = vector.load %arg6[%c0_12, %c0_13] : memref<64x128xbf16, #tpu.memory_space<vmem>>, vector<64x128xbf16>
    %cst_14 = arith.constant dense<0.000000e+00> : vector<16x128xf32>
    %18 = tpu.matmul %16, %17, %cst_14 {dimension_numbers = #tpu.dot_dimension_numbers<[1], [0], [0], [1], [0, 0, 1, 1], [], []>} : vector<16x64xbf16>, vector<64x128xbf16>, vector<16x128xf32> -> vector<16x128xf32>
    %c0_15 = arith.constant 0 : index
    %c0_16 = arith.constant 0 : index
    %19 = vector.load %arg7[%c0_15, %c0_16] : memref<1x128xf32, #tpu.memory_space<vmem>>, vector<1x128xf32>
    %20 = vector.broadcast %19 : vector<1x128xf32> to vector<16x128xf32>
    %21 = arith.addf %18, %20 : vector<16x128xf32>
    %c0_17 = arith.constant 0 : index
    %c0_18 = arith.constant 0 : index
    %22 = vector.load %arg8[%c0_17, %c0_18] : memref<16x128xf32, #tpu.memory_space<vmem>>, vector<16x128xf32>
    tpu.vector_store %arg8[%c0_17, %c0_18], %21 {strides = array<i32>} : memref<16x128xf32, #tpu.memory_space<vmem>>, vector<16x128xf32>,
    return
  }
  func.func @transform_0(%arg0: i32) -> (i32, i32) {
    %c0_i32 = arith.constant 0 : i32
    %c0_i32_0 = arith.constant 0 : i32
    return %arg0, %c0_i32 : i32, i32
  }
  func.func @transform_1(%arg0: i32) -> (i32, i32) {
    %c0_i32 = arith.constant 0 : i32
    %c0_i32_0 = arith.constant 0 : i32
    %c0_i32_1 = arith.constant 0 : i32
    return %c0_i32, %c0_i32_0 : i32, i32
  }
  func.func @transform_2(%arg0: i32) -> (i32, i32) {
    %c0_i32 = arith.constant 0 : i32
    %c0_i32_0 = arith.constant 0 : i32
    %c0_i32_1 = arith.constant 0 : i32
    return %c0_i32, %c0_i32_0 : i32, i32
  }
  func.func @transform_3(%arg0: i32) -> (i32, i32) {
    %c0_i32 = arith.constant 0 : i32
    %c0_i32_0 = arith.constant 0 : i32
    %c0_i32_1 = arith.constant 0 : i32
    return %c0_i32, %c0_i32_0 : i32, i32
  }
  func.func @transform_4(%arg0: i32) -> (i32, i32) {
    %c0_i32 = arith.constant 0 : i32
    %c0_i32_0 = arith.constant 0 : i32
    %c0_i32_1 = arith.constant 0 : i32
    return %c0_i32, %c0_i32_0 : i32, i32
  }
  func.func @transform_5(%arg0: i32) -> (i32, i32) {
    %c0_i32 = arith.constant 0 : i32
    %c0_i32_0 = arith.constant 0 : i32
    %c0_i32_1 = arith.constant 0 : i32
    return %c0_i32, %c0_i32_0 : i32, i32
  }
  func.func @transform_6(%arg0: i32) -> (i32, i32) {
    %c0_i32 = arith.constant 0 : i32
    %c0_i32_0 = arith.constant 0 : i32
    %c0_i32_1 = arith.constant 0 : i32
    return %c0_i32, %c0_i32_0 : i32, i32
  }
  func.func @transform_7(%arg0: i32) -> (i32, i32) {
    %c0_i32 = arith.constant 0 : i32
    %c0_i32_0 = arith.constant 0 : i32
    return %arg0, %c0_i32 : i32, i32
  }
}

</mosaic_0001>

<bundles_post_ra>
// kernel: tpu_custom_call.1
= control target key start
LH: loop header
LB: loop body
LE: loop exit
PB: predicated region body
PF: predicated region fallthrough
CT: control target
= control target key end

     0   :  { %s1158_s0 = inlined_call_operand.vmem [shape: bf16[48,8], index: 0, kind: input, shape index: {}]   ;;  %s1159_s1 = inlined_call_operand.hbm [shape: bf16[8,64], index: 1, kind: input, shape index: {}]   ;;  %s1160_s2 = inlined_call_operand.hbm [shape: f32[1,64], index: 2, kind: input, shape index: {}]   ;;  %s1161_s3 = inlined_call_operand.hbm [shape: bf16[64,64], index: 3, kind: input, shape index: {}]   ;;  %s1162_s4 = inlined_call_operand.hbm [shape: f32[1,64], index: 4, kind: input, shape index: {}]   ;;  %s1163_s5 = inlined_call_operand.vmem [shape: bf16[64,128], index: 5, kind: input, shape index: {}]   ;;  %s1164_s6 = inlined_call_operand.vmem [shape: f32[1,128], index: 6, kind: input, shape index: {}]   ;;  %s1165_s7 = inlined_call_operand.hbm [shape: f32[48,128], index: 7, kind: output, shape index: {}]  }
   0x1   :  { %1166 = sst [smem:[#allocation16_spill]] %s1159_s1 }
   0x2   :  { %1167 = sst [smem:[#allocation17_spill]] %s1160_s2 }
   0x3   :  { %12 = vsyncpa [#allocation3], 0 }
   0x4   :  { %13 = vsyncpa [#allocation6], 0 }
   0x5   :  { %14 = vsyncpa [#allocation9], 0 }
   0x6   :  { %15 = vsyncpa [#allocation4], 0 }
   0x7   :  { %17 = vsyncpa [#allocation4 + $0x1], 0  ;;  %s1010_s24 = smov 0   ;;  %s1012_s25 = smov 0  }
   0x8   :  { %s1014_s26 = smov 0   ;;  %s1016_s27 = smov 0  }
   0x9 LB: > { %s1031_s28 = sadd.s32 4294967295, %s960_s27   ;;  %s610_s29 = sadd.s32 4294967294, %s960_s27   ;;  %s960_s27 = sphi %s1016_s27, %s1179_s27   ;;  %s956_s26 = sphi %s1014_s26, %s1178_s26   ;;  %s952_s25 = sphi %s1012_s25, %s1177_s25   ;;  %s948_s24 = sphi %s1010_s24, %s1176_s24  }
   0xa   : > { %s1035_s30 = sadd.s32 1, %s960_s27   ;;  %s182_s8 = sadd.s32 1, %s956_s26 }
   0xb   : > { %s179_s9 = ssub.s32 %s960_s27, %s1035_s30  ;;  %p192_p0 = scmp.ne.s32.totalorder %s956_s26, %s952_s25 }
   0xc   : > { %p180_p1 = scmp.eq.s32.totalorder %s179_s9, 0  ;;  %p193_p2 = scmp.eq.s32.totalorder %s1031_s28, 2 }
   0xd   : > { %p198_p3 = scmp.ne.s32.totalorder %s952_s25, %s948_s24  ;;  %p199_p4 = scmp.eq.s32.totalorder %s610_s29, 2 }
   0xe   : > { %s1046_s10 = scalar_select %p180_p1, %s956_s26, %s182_s8  }
   0xf   : > { %p1048_p5 = por %p193_p2, %p192_p0  ;;  %p1052_p6 = por %p199_p4, %p198_p3 }
  0x10   : > { %1168 = sst [smem:[#allocation15_spill]] %s1046_s10  ;;  %p611_p7 = scmp.ge.s32.totalorder %s960_s27, 1 }
  0x11   : > { %p206_p8 = scmp.lt.s32.totalorder %s960_s27, 4  ;;  %p714_p9 = scmp.eq.s32.totalorder %s1031_s28, 0 }
  0x12   : > { %s1172_s2 = sld [smem:[#allocation17_spill]]  ;;  %s962_s17 = smov [#allocation5]  }
  0x13   : > { %p1059_p10 = pnand %p611_p7, %p206_p8  ;;  %s232_s18 = sshll.u32 %s962_s17, 4  ;;  %s233_s18 = int_to_ptr.vmem [resolvable:$true] %s232_s18 }
  0x14   : > { %s1173_s1 = sld [smem:[#allocation16_spill]]  ;;  %s241_s8 = sshll.u32 %s1161_s3, 4  ;;  %s242_s8 = int_to_ptr.hbm [resolvable:$true] %s241_s8 }
  0x15   : > { %p697_p11 = pneg %p1059_p10  ;;  %s963_s9 = smov [#allocation2]  }
  0x16   : > { %s220_s14 = sshll.u32 %s963_s9, 4  ;;  %s964_s15 = smov [#allocation7]   ;;  %s221_s14 = int_to_ptr.vmem [resolvable:$true] %s220_s14 }
  0x17   : > { %p1073_p12 = pnand %p714_p9, %p697_p11  ;;  %s243_s17 = sshll.u32 %s964_s15, 4  ;;  %s244_s17 = int_to_ptr.vmem [resolvable:$true] %s243_s17 }
  0x18   : > { %s230_s16 = sshll.u32 %s1172_s2, 4  ;;  %s965_s2 = smov 64   ;;  %s231_s16 = int_to_ptr.hbm [resolvable:$true] %s230_s16 }
  0x19   : > { %703 = dma.hbm_to_vmem [thread:$0]  (!%p1073_p12), %s231_s16, 16, %s233_s18, [#allocation6]  }
  0x1a   : > { %s218_s21 = sshll.u32 %s1173_s1, 4  ;;  %s256_s1 = sshll.u32 %s1162_s4, 4  ;;  %s219_s21 = int_to_ptr.hbm [resolvable:$true] %s218_s21  ;;  %s257_s1 = int_to_ptr.hbm [resolvable:$true] %s256_s1 }
  0x1b   : > { %700 = dma.hbm_to_vmem [thread:$0]  (!%p1073_p12), %s219_s21, 64, %s221_s14, [#allocation3]  }
  0x1c   : > { %s966_s10 = smov 4   ;;  %s967_s23 = smov [#allocation8]  }
  0x1d   : > { %706 = dma.hbm_to_vmem [thread:$0]  (!%p1073_p12), %s242_s8, 512, %s244_s17, [#allocation6], %s965_s2, %s965_s2, %s966_s10  }
  0x1e   : > { %s258_s29 = sshll.u32 %s967_s23, 4  ;;  %286 = sbr.rel (%p1059_p10) target bundleno = 473 (0x1d9), region = 48  ;;  %s259_s29 = int_to_ptr.vmem [resolvable:$true] %s258_s29 }
  0x1f   : > { %709 = dma.hbm_to_vmem [thread:$0]  (!%p1073_p12), %s257_s1, 16, %s259_s29, [#allocation9]  }
  0x23   : > { %931 = dma.done.wait (%p714_p9), [#allocation3], 64  }
  0x24   : > { %933 = vsyncadd (%p714_p9), [#allocation3], 4294967232 }
  0x25   : > { %935 = dma.done.wait (%p714_p9), [#allocation6], 528  }
  0x26   : > { %937 = vsyncadd (%p714_p9), [#allocation6], 4294966768 }
  0x27   : > { %939 = dma.done.wait (%p714_p9), [#allocation9], 16  }
  0x28   : > { %941 = vsyncadd (%p714_p9), [#allocation9], 4294967280  ;;  %s623_s1 = sshll.u32 %s1031_s28, 1  ;;  %vm358_vm0 = vcmask 1043456   ;;  %v344_v0 = vld [vmem:[#allocation2] sm:$0xf] }
  0x29   : > { %p335_p13 = scmp.lt.s32.totalorder %s623_s1, 5  ;;  %v360_v1 = vsel %vm358_vm0, %v344_v0, 0  ;;  %vm354_vm1 = vcmask 64512   ;;  %v673_v3 = vld [vmem:[#allocation7 + $0x18] sm:$0xff]  ;;  %v672_v4 = vld [vmem:[#allocation7 + $0x10] sm:$0xff]  ;;  %v671_v5 = vld [vmem:[#allocation7 + $0x8] sm:$0xff] }
  0x2a   : > { %369 = vmatpush.bf16.msra.mxu0 %v360_v1  ;;  %423 = vmatpush.bf16.msra.mxu1 %v673_v3  ;;  %v670_v6 = vld [vmem:[#allocation7] sm:$0xff]  ;;  %v763_v8 = vld [vmem:[#allocation5] ss:$0 sm:$0xff]  ;;  %vm415_vm2 = vcmask 523264   ;;  %v677_v15 = vld [vmem:[%s1163_s5 + $0x18] sm:$0xff]  ;;  %s331_s19 = sand.u32 1, %s952_s25  }
  0x2b   : > { %s1181_s1 = smov (!%p335_p13, %s623_s1), 5  ;;  %479 = vmatpush.bf16.msra.mxu2 %v677_v15  ;;  %v676_v16 = vld [vmem:[%s1163_s5 + $0x10] sm:$0xff]  ;;  %v675_v17 = vld [vmem:[%s1163_s5 + $0x8] sm:$0xff]  ;;  %v674_v18 = vld [vmem:[%s1163_s5] sm:$0xff]  ;;  %s622_s20 = sshll.u32 %s331_s19, 4 }
  0x2c   : > { %s624_s2 = sshll.u32 %s1181_s1, 2  ;;  %v764_v20 = vld [vmem:[#allocation8] ss:$0 sm:$0xff]  ;;  %v765_v27 = vld [vmem:[%s1164_s6] ss:$0 sm:$0xff]  ;;  %s678_s1 = sshll.u32 %s1031_s28, 4 }
  0x2d   : > { %s338_s16 = scalar_lea.vmem %s1158_s0, %s624_s2  ;;  %s503_s13 = scalar_lea.hbm %s1165_s7, %s678_s1 }
  0x2e   : > { %v669_v2 = vld [vmem:[%s338_s16] sm:$0xff]  ;;  %424 = vmatpush.bf16.msra.mxu1 %v672_v4  ;;  %s333_s16 = scalar_lea.vmem [#allocation10], %s622_s20  ;;  %s506_s21 = sshll.u32 %s503_s13, 4  ;;  %s507_s21 = int_to_ptr.hbm [resolvable:$true] %s506_s21 }
  0x2f   : > { %629 = vmatmul.msk.bf16.vlgmr.msra.gmra.mxu0 %vm354_vm1, %v669_v2  ;;  %480 = vmatpush.bf16.msra.mxu2 %v676_v16  ;;  %s504_s18 = sshll.u32 %s333_s16, 4  ;;  %s492_s22 = scalar_lea.sflag [#allocation4], %s331_s19  ;;  %s505_s18 = int_to_ptr.vmem [resolvable:$true] %s504_s18 }
  0x30   : > { %s900_s8 = sshra.s32 %s507_s21, 4  ;;  %s906_s15 = scalar_lea.hbm %s1165_s7, 48  ;;  %s901_s8 = int_to_ptr.hbm [resolvable:$true] %s900_s8 }
  0x31   : > { %s902_s28 = scalar_lea.hbm %s901_s8, 16  ;;  %p907_p3 = scmp.lt.s32.totalorder %s901_s8, %s1165_s7 }
  0x32   : > { %425 = vmatpush.bf16.msra.mxu1 %v671_v5  ;;  %p903_p0 = scmp.ne.s32.totalorder %s901_s8, %s902_s28  ;;  %p908_p4 = scmp.lt.s32.totalorder %s906_s15, %s902_s28 }
  0x33   : > { %481 = vmatpush.bf16.msra.mxu2 %v675_v17 }
  0x34   : > { %p904_p1 = pnand %p903_p0, %p1048_p5  ;;  %p909_p7 = por %p908_p4, %p907_p3 }
  0x36   : > { %426 = vmatpush.bf16.msra.mxu1 %v670_v6  ;;  %p905_p2 = pneg %p904_p1 }
  0x37   : > { %482 = vmatpush.bf16.msra.mxu2 %v674_v18 }
  0x38   : > { %p910_p8 = pnand %p909_p7, %p905_p2 }
  0xac   : > { %v371_v7 = vpop.f32.mrf.mxu0 }
  0xad   : > { %v372_v9 = vadd.f32 %v763_v8, %v371_v7 }
  0xaf   : > { %v376_v12 = vmax.f32 %v372_v9, 0.0 }
  0xb4   : > { %v373_v10 = vpop.f32.mrf.mxu0 }
  0xb5   : > { %v374_v11 = vadd.f32 %v763_v8, %v373_v10 }
  0xb7   : > { %v377_v13 = vmax.f32 %v374_v11, 0.0 }
  0xb9   : > { %v378_v14 = vpack.c.bf16 %v377_v13, %v376_v12 }
  0xbb   : > { %646 = vmatmul.msk.bf16.vlgmr.msra.gmra.mxu1 %vm415_vm2, %v378_v14 }
 0x138   : > { %v428_v19 = vpop.f32.mrf.mxu1 }
 0x139   : > { %v429_v21 = vadd.f32 %v764_v20, %v428_v19 }
 0x13b   : > { %v433_v24 = vmax.f32 %v429_v21, 0.0 }
 0x140   : > { %v430_v22 = vpop.f32.mrf.mxu1 }
 0x141   : > { %v431_v23 = vadd.f32 %v764_v20, %v430_v22 }
 0x143   : > { %v434_v25 = vmax.f32 %v431_v23, 0.0 }
 0x145   : > { %v435_v26 = vpack.c.bf16 %v434_v25, %v433_v24 }
 0x147   : > { %663 = vmatmul.msk.bf16.vlgmr.msra.gmra.mxu2 %vm415_vm2, %v435_v26 }
 0x1ca   : > { %v484_v28 = vpop.f32.mrf.mxu2 }
 0x1cb   : > { %v485_v29 = vadd.f32 %v765_v27, %v484_v28 }
 0x1cd   : > { %489 = vst [vmem:[%s333_s16] sm:$0xff] %v485_v29 }
 0x1d2   : > { %v486_v30 = vpop.f32.mrf.mxu2 }
 0x1d3   : > { %v487_v31 = vadd.f32 %v765_v27, %v486_v30 }
 0x1d5   : > { %490 = vst [vmem:[%s333_s16 + $0x8] sm:$0xff] %v487_v31 }
 0x1d6   : > { %913 = shalt.err (!%p910_p8)
}
 0x1d7   : > { %s968_s19 = smov 128   ;;  %s969_s23 = smov 8  }
 0x1d8   : > { %695 = dma.vmem_to_hbm [thread:$0]  (%p1048_p5), %s505_s18, 256, %s507_s21, %s492_s22, %s968_s19, %s968_s19, %s969_s23  }
 0x1d9 PF: > { %p722_p9 = scmp.ge.s32.totalorder %s960_s27, 2  ;;  %s521_s29 = sand.u32 1, %s948_s24  }
 0x1da   : > { %s522_s1 = scalar_lea.sflag [#allocation4], %s521_s29 }
 0x1db   : > { %p711_p10 = pnand %p722_p9, %p1052_p6 }
 0x1dd   : > { %p712_p11 = pneg %p711_p10 }
 0x1df   : > { %943 = dma.done.wait (%p712_p11), %s522_s1, 256  }
 0x1e0   : > { %945 = vsyncadd (%p712_p11), %s522_s1, 4294967040  ;;  %s1175_s2 = sld [smem:[#allocation15_spill]]  ;;  %p20_p12 = scmp.ge.s32.totalorder %s1035_s30, 5  }
 0x1e1   : > { %s1176_s24 = smov %s952_s25  ;;  %s1177_s25 = smov %s956_s26 }
 0x1e2   : > { %s1179_s27 = smov %s1035_s30  ;;  %22 = sbr.rel (!%p20_p12) target bundleno = 9 (0x9), region = 100 }
 0x1e6   : > { %s1178_s26 = smov %s1175_s2 }
 0x1e7   :  { %528 = vsyncpa [#allocation3], 1 }
 0x1e8   :  { %530 = vsyncpa [#allocation3 + $0x1], 1 }
 0x1e9   :  { %531 = vsyncpa [#allocation6], 1 }
 0x1ea   :  { %532 = vsyncpa [#allocation9], 1 }
 0x1eb   :  { %533 = vsyncpa [#allocation4], 1 }
 0x1ec   :  { %535 = vsyncpa [#allocation4 + $0x1], 1 }

</bundles_post_ra>
